<compile_context>
chip_gen: v7x
topology: tpu7x:2x2x1
jax: 0.10.0
libtpu: 0.0.40
codegen_flags: <defaults>
</compile_context>

<pallas_src>
import math
from functools import partial

import jax
import jax.numpy as jnp
import numpy as np
from jax.experimental import pallas as pl
from jax.experimental.pallas import tpu as pltpu


def _round_up(x, m):
    return ((x + m - 1) // m) * m


# ----------------------------------------------------------------------------
# Kernel 1: mlr() -- pooled linear head + multilabel_soft_margin_loss + pseudo
# ----------------------------------------------------------------------------
def _mlr_kernel(xs_ref, tag_ref, w_ref, b_ref, cw_ref,
                loss_ref, tgt_ref, pseudo_ref, pool_acc,
                *, tb, tn, n_total, b_total, c_total, mask_patches,
                thresh, use_pseudo):
    # program ids read once at kernel top level (never inside pl.when bodies).
    b_idx = pl.program_id(0)
    n_idx = pl.program_id(1)
    last_n = pl.num_programs(1) - 1

    @pl.when(n_idx == 0)
    def _init():
        pool_acc[...] = jnp.zeros_like(pool_acc)

    # running sum over the patch axis (bf16 stream in, f32 accumulate)
    x = xs_ref[...].astype(jnp.float32)                                  # (tb, tn, D)
    if mask_patches:
        # ragged last patch tile: mask on the *global* patch index so xs never
        # needs a zero-padded HBM copy.
        pidx = jax.lax.broadcasted_iota(jnp.int32, (tn, 1), 0) + n_idx * tn
        x = jnp.where(pidx < n_total, x, 0.0)
    pool_acc[...] += jnp.sum(x, axis=1)

    @pl.when(n_idx == last_n)
    def _epilogue():
        pooled = pool_acc[...] * (1.0 / n_total)                         # (tb, D) f32
        # bf16 MXU feed (w_ref is bf16), f32 accumulation.
        logits = jnp.dot(pooled.astype(jnp.bfloat16), w_ref[...],
                         preferred_element_type=jnp.float32) + b_ref[...]
        tag = tag_ref[...].astype(jnp.float32)                           # (tb, Cp)

        col_ids = jax.lax.broadcasted_iota(jnp.int32, (1, logits.shape[1]), 1)
        row_ids = jax.lax.broadcasted_iota(jnp.int32, (tb, 1), 0) + b_idx * tb
        row_valid = row_ids < b_total                                    # (tb, 1)

        if use_pseudo:
            # sigmoid(x) > tau  <=>  x > logit(tau); never flip padded class cols
            targets = jnp.where((logits > thresh) & (col_ids < c_total), 1.0, tag)
        else:
            targets = tag

        # multilabel_soft_margin_loss:
        #   -(t*logsig(x) + (1-t)*logsig(-x)) == (1-t)*x - logsig(x)
        # single-branch logsig: min(x,0) - log1p(exp(-|x|))
        log_sig = jnp.minimum(logits, 0.0) - jnp.log1p(jnp.exp(-jnp.abs(logits)))
        loss_el = ((1.0 - targets) * logits - log_sig) * cw_ref[...]
        loss_el = jnp.where(row_valid, loss_el, 0.0)      # kill padded batch rows
        partial_loss = jnp.sum(loss_el) * (1.0 / c_total)
        loss_ref[...] = jnp.zeros(loss_ref.shape, jnp.float32) + partial_loss

        pseudo = (jnp.sum(targets - tag, axis=-1, keepdims=True) > 0.0
                  ).astype(jnp.float32)                                   # (tb, 1)
        tgt_ref[...] = (targets * pseudo).astype(tgt_ref.dtype)
        pseudo_ref[...] = jnp.broadcast_to(
            pseudo, pseudo_ref.shape).astype(pseudo_ref.dtype)


def mlr_pallas(xs, w_dec, b_dec, tag, class_weight, tau, epoch, change_epoch):
    """image_spatial_feature (B, N, D) -> (l_mlr, targets*pseudo, pseudo)."""
    B, N, D = xs.shape
    C = w_dec.shape[1]

    # tile selection: tb=32 keeps VMEM small enough for v7x (64 MiB) while giving
    # >=2 batch tiles (megacore 'parallel' axis) once B >= 16; tn=128 gives
    # multi-MiB xs DMAs at production D without blowing the double buffer.
    if B <= 32:
        tb = _round_up((B + 1) // 2, 8) if B >= 16 else B
    else:
        tb = 32
    nb = -(-B // tb)
    Bpad = nb * tb

    tn = N if N <= 128 else 128
    nn = -(-N // tn)
    mask_patches = (N % tn) != 0

    Cp = _round_up(C, 128)

    # xs is streamed straight from HBM (no padded copy of the dominant tensor).
    # Only the small per-class tensors get (cheap) padded copies; padded class
    # columns carry zero weights so they contribute nothing to the loss.
    tag_p = jnp.zeros((Bpad, Cp), jnp.bfloat16).at[:B, :C].set(tag.astype(jnp.bfloat16))
    w_p = jnp.zeros((D, Cp), jnp.bfloat16).at[:, :C].set(w_dec.astype(jnp.bfloat16))
    b_p = jnp.zeros((1, Cp), jnp.float32).at[:, :C].set(
        b_dec.reshape(1, -1).astype(jnp.float32))
    cw_p = jnp.zeros((1, Cp), jnp.float32).at[:, :C].set(
        class_weight.reshape(1, -1).astype(jnp.float32))

    use_pseudo = bool(epoch >= change_epoch)
    thresh = float(math.log(tau) - math.log1p(-tau))       # logit(tau)

    kernel = partial(_mlr_kernel, tb=int(tb), tn=int(tn), n_total=int(N),
                     b_total=int(B), c_total=int(C),
                     mask_patches=bool(mask_patches),
                     thresh=thresh, use_pseudo=use_pseudo)

    loss_part, tgt_p, pseudo_p = pl.pallas_call(
        kernel,
        out_shape=(jax.ShapeDtypeStruct((nb, 8, 128), jnp.float32),   # per-tile loss slab
                   jax.ShapeDtypeStruct((Bpad, Cp), jnp.bfloat16),    # targets * pseudo
                   jax.ShapeDtypeStruct((Bpad, 128), jnp.bfloat16)),  # pseudo (lane-bcast)
        grid_spec=pltpu.PrefetchScalarGridSpec(
            num_scalar_prefetch=0,
            grid=(nb, nn),
            in_specs=[
                pl.BlockSpec((tb, tn, D), lambda b, n: (b, n, 0)),    # xs stream (bf16)
                pl.BlockSpec((tb, Cp), lambda b, n: (b, 0)),          # tag (bf16)
                pl.BlockSpec((D, Cp), lambda b, n: (0, 0)),           # w_dec (bf16)
                pl.BlockSpec((1, Cp), lambda b, n: (0, 0)),           # b_dec
                pl.BlockSpec((1, Cp), lambda b, n: (0, 0)),           # class_weight
            ],
            out_specs=(
                pl.BlockSpec((1, 8, 128), lambda b, n: (b, 0, 0)),
                pl.BlockSpec((tb, Cp), lambda b, n: (b, 0)),
                pl.BlockSpec((tb, 128), lambda b, n: (b, 0)),
            ),
            scratch_shapes=[pltpu.VMEM((tb, D), jnp.float32)],        # pooled-sum acc
        ),
        compiler_params=pltpu.CompilerParams(
            dimension_semantics=("parallel", "arbitrary"),
            vmem_limit_bytes=64 * 1024 * 1024),
    )(xs, tag_p, w_p, b_p, cw_p)

    l_mlr = jnp.sum(loss_part[:, 0, 0]) * (1.0 / B)
    return l_mlr, tgt_p[:B, :C], pseudo_p[:B, :1]


# ----------------------------------------------------------------------------
# Kernel 2: itc() -- projections, L2-normalize, one similarity matmul, CE
# ----------------------------------------------------------------------------
def _itc_kernel(temp_ref, img_ref, txt_ref, pseudo_ref,
                wv_ref, bv_ref, wt_ref, bt_ref, loss_ref, *, b_real, bp):
    f32 = jnp.float32
    # bf16 inputs, f32 accumulation on the MXU
    zi = jnp.dot(img_ref[...], wv_ref[...], preferred_element_type=f32) + bv_ref[...]
    zt = jnp.dot(txt_ref[...], wt_ref[...], preferred_element_type=f32) + bt_ref[...]
    # F.normalize(dim=-1, eps=1e-12) via rsqrt (EUP)
    zi = zi * jax.lax.rsqrt(jnp.maximum(jnp.sum(zi * zi, -1, keepdims=True), 1e-24))
    zt = zt * jax.lax.rsqrt(jnp.maximum(jnp.sum(zt * zt, -1, keepdims=True), 1e-24))
    # fold 1/temp into zi once (sim_t2i == sim.T handled with column reductions)
    zi = zi * (1.0 / temp_ref[0, 0])

    dn = (((1,), (1,)), ((), ()))
    sim = jax.lax.dot_general(zi, zt, dn, preferred_element_type=f32)   # (bp, 2bp)

    NEG = f32(-1e30)
    # additive validity biases (no full masked copies of sim)
    col_i = jax.lax.broadcasted_iota(jnp.int32, (1, 2 * bp), 1)
    txt_valid = (col_i < b_real) | ((col_i >= bp) & (col_i < bp + b_real))
    col_bias = jnp.where(txt_valid, 0.0, NEG)                           # (1, 2bp)
    row_i = jax.lax.broadcasted_iota(jnp.int32, (bp, 1), 0)
    row_bias = jnp.where(row_i < b_real, 0.0, NEG)                      # (bp, 1)
    valid_col_f = (row_i < b_real).astype(f32)                          # (bp, 1)
    pseudo = pseudo_ref[...][:, :1].astype(f32)                         # (bp, 1)

    eye = (jax.lax.broadcasted_iota(jnp.int32, (bp, bp), 0)
           == jax.lax.broadcasted_iota(jnp.int32, (bp, bp), 1)).astype(f32)
    diag1_c = jnp.sum(sim[:, :bp] * eye, axis=1, keepdims=True)         # sim[i, i]
    diag2_c = jnp.sum(sim[:, bp:] * eye, axis=1, keepdims=True)         # sim[i, bp+i]

    # ---- i2t: row-wise log-sum-exp over valid text columns ----
    s_r = sim + col_bias
    m_r = jnp.max(s_r, axis=1, keepdims=True)
    lse_r = m_r + jnp.log(jnp.sum(jnp.exp(s_r - m_r), axis=1, keepdims=True))
    loss_i2t = -jnp.sum(valid_col_f * ((diag1_c - lse_r)
                                       + pseudo * (diag2_c - lse_r))) * (1.0 / b_real)

    # ---- t2i: column-wise log-sum-exp over valid image rows (== softmax(sim.T)) ----
    s_c = sim + row_bias
    m_c = jnp.max(s_c, axis=0, keepdims=True)
    lse_c = m_c + jnp.log(jnp.sum(jnp.exp(s_c - m_c), axis=0, keepdims=True))  # (1, 2bp)
    diag1_r = jnp.sum(sim[:, :bp] * eye, axis=0, keepdims=True)         # (1, bp)
    diag2_r = jnp.sum(sim[:, bp:] * eye, axis=0, keepdims=True)         # (1, bp)
    pseudo_r = jnp.sum(eye * pseudo, axis=0, keepdims=True)             # (1, bp)
    valid_row_f = (jax.lax.broadcasted_iota(jnp.int32, (1, bp), 1) < b_real).astype(f32)
    loss_t2i = -jnp.sum(valid_row_f * ((diag1_r - lse_c[:, :bp])
                                       + pseudo_r * (diag2_r - lse_c[:, bp:]))
                        ) * (1.0 / (2.0 * b_real))

    loss_ref[...] = jnp.zeros(loss_ref.shape, f32) + 0.5 * (loss_i2t + loss_t2i)


def itc_pallas(img_g, txt_g, pseudo, wv, bv, wt, bt, temp):
    B, Dv = img_g.shape
    Dt = txt_g.shape[1]
    E = wv.shape[1]
    Bp = _round_up(B, 8)
    Ep = _round_up(E, 128)
    bf = jnp.bfloat16

    # small padded copies (bf16 halves the streamed bytes; padded rows/cols are
    # exact zeros so the additive masking in-kernel is sufficient)
    img_p = jnp.zeros((Bp, Dv), bf).at[:B].set(img_g.astype(bf))
    txt_p = jnp.zeros((2 * Bp, Dt), bf)
    txt_p = txt_p.at[:B].set(txt_g[:B].astype(bf)).at[Bp:Bp + B].set(txt_g[B:].astype(bf))
    wv_p = jnp.zeros((Dv, Ep), bf).at[:, :E].set(wv.astype(bf))
    bv_p = jnp.zeros((1, Ep), jnp.float32).at[:, :E].set(bv.reshape(1, -1).astype(jnp.float32))
    wt_p = jnp.zeros((Dt, Ep), bf).at[:, :E].set(wt.astype(bf))
    bt_p = jnp.zeros((1, Ep), jnp.float32).at[:, :E].set(bt.reshape(1, -1).astype(jnp.float32))
    ps_p = jnp.zeros((Bp, 128), jnp.float32).at[:B].set(
        jnp.broadcast_to(pseudo.astype(jnp.float32).reshape(B, 1), (B, 128)))
    temp_arr = jnp.asarray(temp, jnp.float32).reshape(1, 1)

    vmem = pl.BlockSpec(memory_space=pltpu.MemorySpace.VMEM)
    smem = pl.BlockSpec(memory_space=pltpu.MemorySpace.SMEM)
    loss_slab = pl.pallas_call(
        partial(_itc_kernel, b_real=int(B), bp=int(Bp)),
        out_shape=jax.ShapeDtypeStruct((8, 128), jnp.float32),   # lane-dense loss slab
        in_specs=[smem, vmem, vmem, vmem, vmem, vmem, vmem, vmem],
        out_specs=vmem,
        compiler_params=pltpu.CompilerParams(vmem_limit_bytes=64 * 1024 * 1024),
    )(temp_arr, img_p, txt_p, ps_p, wv_p, bv_p, wt_p, bt_p)
    return loss_slab[0, 0]


# ----------------------------------------------------------------------------
# Pure-JAX reference (mirrors the PyTorch semantics and the kernels' bf16 feeds)
# ----------------------------------------------------------------------------
def _ref_forward(xs, img_g, txt_g, tag, params, tau, epoch, change_epoch, temp):
    bf, f32 = jnp.bfloat16, jnp.float32
    # ---- mlr (pooled head fed to the MXU in bf16, like the kernel) ----
    pooled = jnp.mean(xs, axis=1)
    pooled_q = pooled.astype(bf).astype(f32)
    w_q = params["w_dec"].astype(bf).astype(f32)
    logits = pooled_q @ w_q + params["b_dec"]
    targets = tag
    if epoch >= change_epoch:
        targets = jnp.where(jax.nn.sigmoid(logits) > tau, 1.0, tag)
    loss_el = -(targets * jax.nn.log_sigmoid(logits)
                + (1.0 - targets) * jax.nn.log_sigmoid(-logits)) * params["cw"]
    l_mlr = jnp.mean(jnp.sum(loss_el, axis=-1) / logits.shape[-1])
    pseudo = jnp.where(jnp.sum(targets - tag, axis=1) > 0, 1.0, 0.0)[:, None]

    # ---- itc (bf16-quantized inputs, like the kernel wrapper) ----
    img_q = img_g.astype(bf).astype(f32)
    txt_q = txt_g.astype(bf).astype(f32)
    wv_q = params["wv"].astype(bf).astype(f32)
    wt_q = params["wt"].astype(bf).astype(f32)
    zi = img_q @ wv_q + params["bv"]
    zt = txt_q @ wt_q + params["bt"]
    zi = zi / jnp.maximum(jnp.linalg.norm(zi, axis=-1, keepdims=True), 1e-12)
    zt = zt / jnp.maximum(jnp.linalg.norm(zt, axis=-1, keepdims=True), 1e-12)
    sim_i2t = zi @ zt.T / temp
    sim_t2i = zt @ zi.T / temp
    B = img_g.shape[0]
    eye = jnp.eye(B, dtype=f32)
    t_i2t = jnp.concatenate([eye, eye * pseudo], axis=1)
    t_t2i = jnp.concatenate([eye, eye * pseudo], axis=0)
    li2t = -jnp.sum(jax.nn.log_softmax(sim_i2t, axis=1) * t_i2t, axis=1).mean()
    lt2i = -jnp.sum(jax.nn.log_softmax(sim_t2i, axis=1) * t_t2i, axis=1).mean()
    l_itc = (li2t + lt2i) / 2
    return l_itc, l_mlr


if __name__ == "__main__":
    key = jax.random.PRNGKey(0)
    B, N_PATCH, VISION_W, TEXT_W, EMBED, NUM_CLASS = 2, 16, 32, 32, 16, 8
    TAU, EPOCH, CHANGE_EPOCH = 0.6, 1, 1

    keys = jax.random.split(key, 8)
    # synthetic encoder outputs (ViT / BERT are external pretrained models)
    xs_f32 = jax.random.normal(keys[0], (B, N_PATCH, VISION_W), jnp.float32)
    xs = xs_f32.astype(jnp.bfloat16)          # feed the big feature stream as bf16
    img_g = jax.random.normal(keys[1], (B, VISION_W), jnp.float32)       # CLS token
    txt_g = jax.random.normal(keys[2], (2 * B, TEXT_W), jnp.float32)     # text + tag2text CLS
    tag = (jax.random.uniform(keys[3], (B, NUM_CLASS)) > 0.5).astype(jnp.float32)

    # deterministic parameters
    w_dec = jax.random.normal(keys[4], (VISION_W, NUM_CLASS), jnp.float32) * 0.1
    b_dec = jnp.zeros((1, NUM_CLASS), jnp.float32)
    cw = jnp.ones((1, NUM_CLASS), jnp.float32)                              # class_weight
    wv = jax.random.normal(keys[5], (VISION_W, EMBED), jnp.float32) * 0.1   # vision_proj
    bv = jnp.zeros((1, EMBED), jnp.float32)
    wt = jax.random.normal(keys[6], (TEXT_W, EMBED), jnp.float32) * 0.1     # text_proj
    bt = jnp.zeros((1, EMBED), jnp.float32)
    temp = jnp.clip(jnp.float32(0.07), 0.001, 0.5)                          # temp.clamp_

    # ---- Pallas forward ----
    l_mlr, tgt_pseudo, pseudo = mlr_pallas(xs, w_dec, b_dec, tag, cw,
                                           TAU, EPOCH, CHANGE_EPOCH)
    l_itc = itc_pallas(img_g, txt_g, pseudo, wv, bv, wt, bt, temp)
    jax.block_until_ready((l_mlr, tgt_pseudo, pseudo, l_itc))

    # forward() returns (l_itc / l_itc.detach(), l_mlr / l_mlr.detach())
    out = (l_itc / jax.lax.stop_gradient(l_itc),
           l_mlr / jax.lax.stop_gradient(l_mlr))
    jax.block_until_ready(out)

    # ---- reference check (same bf16-quantized operands on both paths) ----
    params = dict(w_dec=w_dec, b_dec=b_dec, cw=cw, wv=wv, bv=bv, wt=wt, bt=bt)
    ref_itc, ref_mlr = _ref_forward(xs.astype(jnp.float32), img_g, txt_g, tag, params,
                                    TAU, EPOCH, CHANGE_EPOCH, temp)
    np.testing.assert_allclose(np.asarray(l_mlr), np.asarray(ref_mlr),
                               rtol=2e-3, atol=2e-3)
    np.testing.assert_allclose(np.asarray(l_itc), np.asarray(ref_itc),
                               rtol=2e-3, atol=2e-3)

    print("KERNEL_OK")
</pallas_src>

<mosaic_0001>
module attributes {stable_mosaic.version = 11 : i64} {
  func.func @_mlr_kernel(%arg0: i32, %arg1: i32, %arg2: memref<2x16x32xbf16, #tpu.memory_space<vmem>>, %arg3: memref<2x128xbf16, #tpu.memory_space<vmem>>, %arg4: memref<32x128xbf16, #tpu.memory_space<vmem>>, %arg5: memref<1x128xf32, #tpu.memory_space<vmem>>, %arg6: memref<1x128xf32, #tpu.memory_space<vmem>>, %arg7: memref<1x8x128xf32, #tpu.memory_space<vmem>>, %arg8: memref<2x128xbf16, #tpu.memory_space<vmem>>, %arg9: memref<2x128xbf16, #tpu.memory_space<vmem>>, %arg10: memref<2x32xf32, #tpu.memory_space<vmem>>) attributes {dimension_semantics = [#tpu.dimension_semantics<parallel>, #tpu.dimension_semantics<arbitrary>], iteration_bounds = array<i64: 1, 1>, scalar_prefetch = 0 : i64, scratch_operands = 1 : i64, tpu.core_type = #tpu.core_type<tc>, window_params = [{transform_indices = @transform_0, window_bounds = array<i64: 2, 16, 32>}, {transform_indices = @transform_1, window_bounds = array<i64: 2, 128>}, {pipeline_mode = #tpu.pipeline_mode<synchronous>, transform_indices = @transform_2, window_bounds = array<i64: 32, 128>}, {pipeline_mode = #tpu.pipeline_mode<synchronous>, transform_indices = @transform_3, window_bounds = array<i64: 1, 128>}, {pipeline_mode = #tpu.pipeline_mode<synchronous>, transform_indices = @transform_4, window_bounds = array<i64: 1, 128>}, {transform_indices = @transform_5, window_bounds = array<i64: 1, 8, 128>}, {transform_indices = @transform_6, window_bounds = array<i64: 2, 128>}, {transform_indices = @transform_7, window_bounds = array<i64: 2, 128>}]} {
    %c0_i32 = arith.constant 0 : i32
    %0 = arith.cmpi eq, %arg1, %c0_i32 : i32
    %1 = arith.extui %0 : i1 to i32
    %c0_i32_0 = arith.constant 0 : i32
    %2 = arith.cmpi ne, %1, %c0_i32_0 : i32
    scf.if %2 {
      %cst_9 = arith.constant 0.000000e+00 : f32
      %12 = vector.broadcast %cst_9 : f32 to vector<2x32xf32>
      %c0_10 = arith.constant 0 : index
      %c0_11 = arith.constant 0 : index
      %13 = vector.load %arg10[%c0_10, %c0_11] : memref<2x32xf32, #tpu.memory_space<vmem>>, vector<2x32xf32>
      tpu.vector_store %arg10[%c0_10, %c0_11], %12 {strides = array<i32>} : memref<2x32xf32, #tpu.memory_space<vmem>>, vector<2x32xf32>,
    } else {
    }
    %c0 = arith.constant 0 : index
    %c0_1 = arith.constant 0 : index
    %c0_2 = arith.constant 0 : index
    %3 = vector.load %arg2[%c0, %c0_1, %c0_2] : memref<2x16x32xbf16, #tpu.memory_space<vmem>>, vector<2x16x32xbf16>
    %4 = arith.extf %3 : vector<2x16x32xbf16> to vector<2x16x32xf32>
    %c0_3 = arith.constant 0 : index
    %c0_4 = arith.constant 0 : index
    %5 = vector.load %arg10[%c0_3, %c0_4] : memref<2x32xf32, #tpu.memory_space<vmem>>, vector<2x32xf32>
    %cst = arith.constant dense<0.000000e+00> : vector<2x32xf32>
    %6 = vector.multi_reduction <add>, %4, %cst [1] : vector<2x16x32xf32> to vector<2x32xf32>
    %7 = arith.addf %5, %6 : vector<2x32xf32>
    %c0_5 = arith.constant 0 : index
    %c0_6 = arith.constant 0 : index
    %8 = vector.load %arg10[%c0_5, %c0_6] : memref<2x32xf32, #tpu.memory_space<vmem>>, vector<2x32xf32>
    tpu.vector_store %arg10[%c0_5, %c0_6], %7 {strides = array<i32>} : memref<2x32xf32, #tpu.memory_space<vmem>>, vector<2x32xf32>,
    %c0_i32_7 = arith.constant 0 : i32
    %9 = arith.cmpi eq, %arg1, %c0_i32_7 : i32
    %10 = arith.extui %9 : i1 to i32
    %c0_i32_8 = arith.constant 0 : i32
    %11 = arith.cmpi ne, %10, %c0_i32_8 : i32
    scf.if %11 {
      %c0_9 = arith.constant 0 : index
      %c0_10 = arith.constant 0 : index
      %12 = vector.load %arg10[%c0_9, %c0_10] : memref<2x32xf32, #tpu.memory_space<vmem>>, vector<2x32xf32>
      %cst_11 = arith.constant 6.250000e-02 : f32
      %13 = vector.broadcast %cst_11 : f32 to vector<2x32xf32>
      %14 = arith.mulf %12, %13 : vector<2x32xf32>
      %15 = arith.truncf %14 : vector<2x32xf32> to vector<2x32xbf16>
      %c0_12 = arith.constant 0 : index
      %c0_13 = arith.constant 0 : index
      %16 = vector.load %arg4[%c0_12, %c0_13] : memref<32x128xbf16, #tpu.memory_space<vmem>>, vector<32x128xbf16>
      %cst_14 = arith.constant dense<0.000000e+00> : vector<2x128xf32>
      %17 = tpu.matmul %15, %16, %cst_14 {dimension_numbers = #tpu.dot_dimension_numbers<[1], [0], [0], [1], [0, 0, 1, 1], [], []>} : vector<2x32xbf16>, vector<32x128xbf16>, vector<2x128xf32> -> vector<2x128xf32>
      %c0_15 = arith.constant 0 : index
      %c0_16 = arith.constant 0 : index
      %18 = vector.load %arg5[%c0_15, %c0_16] : memref<1x128xf32, #tpu.memory_space<vmem>>, vector<1x128xf32>
      %19 = vector.broadcast %18 : vector<1x128xf32> to vector<2x128xf32>
      %20 = arith.addf %17, %19 : vector<2x128xf32>
      %c0_17 = arith.constant 0 : index
      %c0_18 = arith.constant 0 : index
      %21 = vector.load %arg3[%c0_17, %c0_18] : memref<2x128xbf16, #tpu.memory_space<vmem>>, vector<2x128xbf16>
      %22 = arith.extf %21 : vector<2x128xbf16> to vector<2x128xf32>
      %23 = tpu.iota {dimensions = array<i32: 1>} : vector<1x128xi32>
      %24 = tpu.iota {dimensions = array<i32: 0>} : vector<2x1xi32>
      %c2_i32 = arith.constant 2 : i32
      %25 = arith.muli %arg0, %c2_i32 : i32
      %26 = vector.broadcast %25 : i32 to vector<2x1xi32>
      %27 = arith.addi %24, %26 : vector<2x1xi32>
      %c2_i32_19 = arith.constant 2 : i32
      %28 = vector.broadcast %c2_i32_19 : i32 to vector<2x1xi32>
      %29 = arith.cmpi slt, %27, %28 : vector<2x1xi32>
      %cst_20 = arith.constant 0.405465096 : f32
      %30 = vector.broadcast %cst_20 : f32 to vector<2x128xf32>
      %31 = arith.cmpf ogt, %20, %30 : vector<2x128xf32>
      %c8_i32 = arith.constant 8 : i32
      %32 = vector.broadcast %c8_i32 : i32 to vector<1x128xi32>
      %33 = arith.cmpi slt, %23, %32 : vector<1x128xi32>
      %34 = vector.broadcast %33 : vector<1x128xi1> to vector<2x128xi1>
      %35 = arith.andi %31, %34 : vector<2x128xi1>
      %cst_21 = arith.constant 1.000000e+00 : f32
      %36 = vector.broadcast %cst_21 : f32 to vector<2x128xf32>
      %37 = arith.select %35, %36, %22 : vector<2x128xi1>, vector<2x128xf32>
      %cst_22 = arith.constant 0.000000e+00 : f32
      %38 = vector.broadcast %cst_22 : f32 to vector<2x128xf32>
      %39 = arith.minimumf %20, %38 : vector<2x128xf32>
      %40 = math.absf %20 : vector<2x128xf32>
      %cst_23 = arith.constant 0.000000e+00 : f32
      %41 = vector.broadcast %cst_23 : f32 to vector<2x128xf32>
      %42 = arith.subf %41, %40 : vector<2x128xf32>
      %43 = math.exp %42 : vector<2x128xf32>
      %44 = math.log1p %43 : vector<2x128xf32>
      %45 = arith.subf %39, %44 : vector<2x128xf32>
      %cst_24 = arith.constant 1.000000e+00 : f32
      %46 = vector.broadcast %cst_24 : f32 to vector<2x128xf32>
      %47 = arith.subf %46, %37 : vector<2x128xf32>
      %48 = arith.mulf %47, %20 : vector<2x128xf32>
      %49 = arith.subf %48, %45 : vector<2x128xf32>
      %c0_25 = arith.constant 0 : index
      %c0_26 = arith.constant 0 : index
      %50 = vector.load %arg6[%c0_25, %c0_26] : memref<1x128xf32, #tpu.memory_space<vmem>>, vector<1x128xf32>
      %51 = vector.broadcast %50 : vector<1x128xf32> to vector<2x128xf32>
      %52 = arith.mulf %49, %51 : vector<2x128xf32>
      %cst_27 = arith.constant 0.000000e+00 : f32
      %53 = vector.shape_cast %29 : vector<2x1xi1> to vector<2x1xi1>
      %54 = vector.broadcast %53 : vector<2x1xi1> to vector<2x128xi1>
      %55 = vector.broadcast %cst_27 : f32 to vector<2x128xf32>
      %56 = arith.select %54, %52, %55 : vector<2x128xi1>, vector<2x128xf32>
      %57 = vector.shape_cast %56 : vector<2x128xf32> to vector<1x2x128xf32>
      %cst_28 = arith.constant dense<0.000000e+00> : vector<1xf32>
      %58 = vector.multi_reduction <add>, %57, %cst_28 [1, 2] : vector<1x2x128xf32> to vector<1xf32>
      %59 = vector.shape_cast %58 : vector<1xf32> to vector<1x1x1xf32>
      %60 = vector.extract %59[0, 0, 0] : f32 from vector<1x1x1xf32>
      %cst_29 = arith.constant 1.250000e-01 : f32
      %61 = arith.mulf %60, %cst_29 : f32
      %cst_30 = arith.constant 0.000000e+00 : f32
      %62 = vector.broadcast %cst_30 : f32 to vector<1x8x128xf32>
      %63 = vector.broadcast %61 : f32 to vector<1x8x128xf32>
      %64 = arith.addf %62, %63 : vector<1x8x128xf32>
      %c0_31 = arith.constant 0 : index
      %c0_32 = arith.constant 0 : index
      %c0_33 = arith.constant 0 : index
      %65 = vector.load %arg7[%c0_31, %c0_32, %c0_33] : memref<1x8x128xf32, #tpu.memory_space<vmem>>, vector<1x8x128xf32>
      tpu.vector_store %arg7[%c0_31, %c0_32, %c0_33], %64 {strides = array<i32>} : memref<1x8x128xf32, #tpu.memory_space<vmem>>, vector<1x8x128xf32>,
      %66 = arith.subf %37, %22 : vector<2x128xf32>
      %cst_34 = arith.constant dense<0.000000e+00> : vector<2xf32>
      %67 = vector.multi_reduction <add>, %66, %cst_34 [1] : vector<2x128xf32> to vector<2xf32>
      %68 = vector.shape_cast %67 : vector<2xf32> to vector<2x1xf32>
      %cst_35 = arith.constant 0.000000e+00 : f32
      %69 = vector.broadcast %cst_35 : f32 to vector<2x1xf32>
      %70 = arith.cmpf ogt, %68, %69 : vector<2x1xf32>
      %71 = arith.extui %70 : vector<2x1xi1> to vector<2x1xi32>
      %72 = arith.sitofp %71 : vector<2x1xi32> to vector<2x1xf32>
      %73 = vector.broadcast %72 : vector<2x1xf32> to vector<2x128xf32>
      %74 = arith.mulf %37, %73 : vector<2x128xf32>
      %75 = arith.truncf %74 : vector<2x128xf32> to vector<2x128xbf16>
      %c0_36 = arith.constant 0 : index
      %c0_37 = arith.constant 0 : index
      %76 = vector.load %arg8[%c0_36, %c0_37] : memref<2x128xbf16, #tpu.memory_space<vmem>>, vector<2x128xbf16>
      tpu.vector_store %arg8[%c0_36, %c0_37], %75 {strides = array<i32>} : memref<2x128xbf16, #tpu.memory_space<vmem>>, vector<2x128xbf16>,
      %77 = vector.shape_cast %72 : vector<2x1xf32> to vector<2x1xf32>
      %78 = vector.broadcast %77 : vector<2x1xf32> to vector<2x128xf32>
      %79 = arith.truncf %78 : vector<2x128xf32> to vector<2x128xbf16>
      %c0_38 = arith.constant 0 : index
      %c0_39 = arith.constant 0 : index
      %80 = vector.load %arg9[%c0_38, %c0_39] : memref<2x128xbf16, #tpu.memory_space<vmem>>, vector<2x128xbf16>
      tpu.vector_store %arg9[%c0_38, %c0_39], %79 {strides = array<i32>} : memref<2x128xbf16, #tpu.memory_space<vmem>>, vector<2x128xbf16>,
    } else {
    }
    return
  }
  func.func @transform_0(%arg0: i32, %arg1: i32) -> (i32, i32, i32) {
    %c0_i32 = arith.constant 0 : i32
    %c0_i32_0 = arith.constant 0 : i32
    return %arg0, %arg1, %c0_i32 : i32, i32, i32
  }
  func.func @transform_1(%arg0: i32, %arg1: i32) -> (i32, i32) {
    %c0_i32 = arith.constant 0 : i32
    %c0_i32_0 = arith.constant 0 : i32
    return %arg0, %c0_i32 : i32, i32
  }
  func.func @transform_2(%arg0: i32, %arg1: i32) -> (i32, i32) {
    %c0_i32 = arith.constant 0 : i32
    %c0_i32_0 = arith.constant 0 : i32
    %c0_i32_1 = arith.constant 0 : i32
    return %c0_i32, %c0_i32_0 : i32, i32
  }
  func.func @transform_3(%arg0: i32, %arg1: i32) -> (i32, i32) {
    %c0_i32 = arith.constant 0 : i32
    %c0_i32_0 = arith.constant 0 : i32
    %c0_i32_1 = arith.constant 0 : i32
    return %c0_i32, %c0_i32_0 : i32, i32
  }
  func.func @transform_4(%arg0: i32, %arg1: i32) -> (i32, i32) {
    %c0_i32 = arith.constant 0 : i32
    %c0_i32_0 = arith.constant 0 : i32
    %c0_i32_1 = arith.constant 0 : i32
    return %c0_i32, %c0_i32_0 : i32, i32
  }
  func.func @transform_5(%arg0: i32, %arg1: i32) -> (i32, i32, i32) {
    %c0_i32 = arith.constant 0 : i32
    %c0_i32_0 = arith.constant 0 : i32
    %c0_i32_1 = arith.constant 0 : i32
    return %arg0, %c0_i32, %c0_i32_0 : i32, i32, i32
  }
  func.func @transform_6(%arg0: i32, %arg1: i32) -> (i32, i32) {
    %c0_i32 = arith.constant 0 : i32
    %c0_i32_0 = arith.constant 0 : i32
    return %arg0, %c0_i32 : i32, i32
  }
  func.func @transform_7(%arg0: i32, %arg1: i32) -> (i32, i32) {
    %c0_i32 = arith.constant 0 : i32
    %c0_i32_0 = arith.constant 0 : i32
    return %arg0, %c0_i32 : i32, i32
  }
}

</mosaic_0001>

<bundles_post_ra>
// kernel: tpu_custom_call.1
= control target key start
LH: loop header
LB: loop body
LE: loop exit
PB: predicated region body
PF: predicated region fallthrough
CT: control target
= control target key end

     0   :  { %13 = vsyncpa [#allocation4], 0  ;;  %s718_s0 = inlined_call_operand.hbm [shape: bf16[2,16,32], index: 0, kind: input, shape index: {}]   ;;  %s719_s1 = inlined_call_operand.hbm [shape: bf16[2,128], index: 1, kind: input, shape index: {}]   ;;  %s720_s2 = inlined_call_operand.hbm [shape: bf16[32,128], index: 2, kind: input, shape index: {}]   ;;  %s721_s3 = inlined_call_operand.hbm [shape: f32[1,128], index: 3, kind: input, shape index: {}]   ;;  %s722_s4 = inlined_call_operand.hbm [shape: f32[1,128], index: 4, kind: input, shape index: {}]   ;;  %s723_s5 = inlined_call_operand.hbm [shape: f32[1,8,128], index: 5, kind: output, shape index: {0}]   ;;  %s724_s6 = inlined_call_operand.hbm [shape: bf16[2,128], index: 6, kind: output, shape index: {1}]   ;;  %s725_s7 = inlined_call_operand.hbm [shape: bf16[2,128], index: 7, kind: output, shape index: {2}]  }
   0x1   :  { %14 = vsyncpa [#allocation7], 0 }
   0x2   :  { %15 = vsyncpa [#allocation10], 0 }
   0x3   :  { %16 = vsyncpa [#allocation5], 0 }
   0x4   :  { %17 = vsyncpa [#allocation14], 0  ;;  %s550_s24 = smov [#allocation6]   ;;  %s551_s26 = smov [#allocation9]  }
   0x5   :  { %s36_s25 = sshll.u32 %s550_s24, 4  ;;  %s58_s27 = sshll.u32 %s551_s26, 4  ;;  %s37_s25 = int_to_ptr.vmem [resolvable:$true] %s36_s25  ;;  %s59_s27 = int_to_ptr.vmem [resolvable:$true] %s58_s27 }
   0x6   :  { %s364_s30 = scalar_lea.hbm %s719_s1, 16 }
   0x7   :  { %p365_p0 = scmp.ne.s32.totalorder %s719_s1, %s364_s30  ;;  %p368_p1 = scmp.lt.u32.totalorder %s364_s30, %s719_s1 }
   0x9   :  { %p370_p2 = pnand %p368_p1, %p365_p0 }
   0xb   :  { %373 = shalt.err (!%p370_p2)
}
   0xc   :  { %s374_s12 = scalar_lea.vmem %s37_s25, 16  ;;  %s378_s13 = scalar_lea.vmem %s37_s25, 32 }
   0xd   :  { %p375_p3 = scmp.ne.s32.totalorder %s37_s25, %s374_s12  ;;  %p379_p4 = scmp.lt.s32.totalorder %s37_s25, %s37_s25 }
   0xe   :  { %p380_p5 = scmp.lt.s32.totalorder %s378_s13, %s374_s12 }
  0x10   :  { %p381_p6 = por %p380_p5, %p379_p4 }
  0x12   :  { %p382_p7 = pnand %p381_p6, %p375_p3 }
  0x14   :  { %385 = shalt.err (!%p382_p7)
}
  0x15   :  { %39 = dma.hbm_to_vmem [thread:$0]  %s719_s1, 16, %s37_s25, [#allocation7]  }
  0x16   :  { %s386_s18 = scalar_lea.hbm %s721_s3, 16 }
  0x17   :  { %p387_p8 = scmp.ne.s32.totalorder %s721_s3, %s386_s18  ;;  %p390_p9 = scmp.lt.u32.totalorder %s386_s18, %s721_s3 }
  0x19   :  { %p392_p10 = pnand %p390_p9, %p387_p8 }
  0x1b   :  { %395 = shalt.err (!%p392_p10)
}
  0x1c   :  { %s396_s23 = scalar_lea.vmem %s59_s27, 16  ;;  %s400_s24 = scalar_lea.vmem %s59_s27, 32 }
  0x1d   :  { %p397_p11 = scmp.ne.s32.totalorder %s59_s27, %s396_s23  ;;  %p401_p12 = scmp.lt.s32.totalorder %s59_s27, %s59_s27 }
  0x1e   :  { %p402_p13 = scmp.lt.s32.totalorder %s400_s24, %s396_s23 }
  0x20   :  { %p403_p0 = por %p402_p13, %p401_p12 }
  0x22   :  { %p404_p1 = pnand %p403_p0, %p397_p11 }
  0x24   :  { %407 = shalt.err (!%p404_p1)
}
  0x25   :  { %61 = dma.hbm_to_vmem [thread:$0]  %s721_s3, 16, %s59_s27, [#allocation10]  }
  0x26   :  { %s552_s26 = smov [#allocation3]   ;;  %s408_s8 = scalar_lea.hbm %s718_s0, 256 }
  0x27   :  { %s23_s28 = sshll.u32 %s552_s26, 4  ;;  %p409_p2 = scmp.ne.s32.totalorder %s718_s0, %s408_s8  ;;  %s24_s28 = int_to_ptr.vmem [resolvable:$true] %s23_s28 }
  0x28   :  { %p412_p3 = scmp.lt.u32.totalorder %s408_s8, %s718_s0 }
  0x2a   :  { %p414_p4 = pnand %p412_p3, %p409_p2 }
  0x2c   :  { %417 = shalt.err (!%p414_p4)
}
  0x2d   :  { %s418_s13 = scalar_lea.vmem %s24_s28, 256  ;;  %p423_p6 = scmp.lt.s32.totalorder %s24_s28, %s24_s28 }
  0x2e   :  { %p419_p5 = scmp.ne.s32.totalorder %s24_s28, %s418_s13  ;;  %p424_p7 = scmp.lt.s32.totalorder %s418_s13, %s418_s13 }
  0x30   :  { %p425_p8 = por %p424_p7, %p423_p6 }
  0x32   :  { %p426_p9 = pnand %p425_p8, %p419_p5 }
  0x34   :  { %429 = shalt.err (!%p426_p9)
}
  0x35   :  { %s553_s3 = smov 64   ;;  %s554_s27 = smov 4  }
  0x36   :  { %29 = dma.hbm_to_vmem [thread:$0]  %s718_s0, 256, %s24_s28, [#allocation4], %s553_s3, %s553_s3, %s554_s27  }
  0x37   :  { %s555_s16 = smov [#allocation8]   ;;  %s556_s18 = smov [#allocation11]  }
  0x38   :  { %s45_s17 = sshll.u32 %s555_s16, 4  ;;  %s68_s19 = sshll.u32 %s556_s18, 4  ;;  %s46_s17 = int_to_ptr.vmem [resolvable:$true] %s45_s17  ;;  %s69_s19 = int_to_ptr.vmem [resolvable:$true] %s68_s19 }
  0x39   :  { %s430_s22 = scalar_lea.hbm %s720_s2, 256 }
  0x3a   :  { %p431_p10 = scmp.ne.s32.totalorder %s720_s2, %s430_s22  ;;  %p434_p11 = scmp.lt.u32.totalorder %s430_s22, %s720_s2 }
  0x3c   :  { %p436_p12 = pnand %p434_p11, %p431_p10 }
  0x3e   :  { %439 = shalt.err (!%p436_p12)
}
  0x3f   :  { %s440_s0 = scalar_lea.vmem %s46_s17, 256  ;;  %p445_p0 = scmp.lt.s32.totalorder %s46_s17, %s46_s17 }
  0x40   :  { %p441_p13 = scmp.ne.s32.totalorder %s46_s17, %s440_s0  ;;  %p446_p1 = scmp.lt.s32.totalorder %s440_s0, %s440_s0 }
  0x42   :  { %p447_p2 = por %p446_p1, %p445_p0 }
  0x44   :  { %p448_p3 = pnand %p447_p2, %p441_p13 }
  0x46   :  { %451 = shalt.err (!%p448_p3)
}
  0x47   :  { %51 = dma.hbm_to_vmem [thread:$0]  %s720_s2, 256, %s46_s17, [#allocation7], %s553_s3, %s553_s3, %s554_s27  }
  0x48   :  { %s452_s8 = scalar_lea.hbm %s722_s4, 16 }
  0x49   :  { %p453_p4 = scmp.ne.s32.totalorder %s722_s4, %s452_s8  ;;  %p456_p5 = scmp.lt.u32.totalorder %s452_s8, %s722_s4 }
  0x4b   :  { %p458_p6 = pnand %p456_p5, %p453_p4 }
  0x4d   :  { %461 = shalt.err (!%p458_p6)
}
  0x4e   :  { %s462_s13 = scalar_lea.vmem %s69_s19, 16  ;;  %s466_s14 = scalar_lea.vmem %s69_s19, 32 }
  0x4f   :  { %p463_p7 = scmp.ne.s32.totalorder %s69_s19, %s462_s13  ;;  %p467_p8 = scmp.lt.s32.totalorder %s69_s19, %s69_s19 }
  0x50   :  { %p468_p9 = scmp.lt.s32.totalorder %s466_s14, %s462_s13 }
  0x52   :  { %p469_p10 = por %p468_p9, %p467_p8 }
  0x54   :  { %p470_p11 = pnand %p469_p10, %p463_p7 }
  0x56   :  { %473 = shalt.err (!%p470_p11)
}
  0x57   :  { %71 = dma.hbm_to_vmem [thread:$0]  %s722_s4, 16, %s69_s19, [#allocation10]  }
  0x58   :  { %540 = dma.done.wait [#allocation4], 256  }
  0x59   :  { %541 = vsyncadd [#allocation4], 4294967040 }
  0x5a   :  { %542 = dma.done.wait [#allocation7], 272  }
  0x5b   :  { %543 = vsyncadd [#allocation7], 4294967024 }
  0x5c   :  { %544 = dma.done.wait [#allocation10], 32  }
  0x5d   :  { %545 = vsyncadd [#allocation10], 4294967264  ;;  %vm92_vm0 = vcmask 254976   ;;  %v557_v0 = vmov 0.0   ;;  %vm558_vm1 = vmmov 0   ;;  %v358_v1 = vld [vmem:[#allocation8] sm:$0xff]   ;;  %v204_v42 = vlaneseq }
  0x5e   :  { %93 = vst.msk [vmem:[#allocation2] sm:$0x3] %vm92_vm0, %v557_v0  ;;  %336 = vmatprep.subr.bf16.mxu0 %v557_v0  ;;  %340 = vmatprep.mubr.msk.bf16.mxu0 %vm558_vm1, %v557_v0  ;;  %v359_v2 = vld [vmem:[#allocation8 + $0x8] sm:$0xff]   ;;  %v332_v4 = vld [vmem:[#allocation3 + $0x8] sm:$0xff]   ;;  %vm103_vm2 = vcmask 261120   ;;  %vm124_vm3 = vcmask 1041409  }
  0x5f   :  { %337 = vmatpush3.bf16.msra.mxu0 %v358_v1  ;;  %v325_v3 = vld [vmem:[#allocation3] sm:$0xff]   ;;  %v330_v7 = vunpack.c.l.bf16 %v332_v4  ;;  %v331_v8 = vunpack.c.h.bf16 %v332_v4  ;;  %v205_v44 = vand.u32 127, %v204_v42  ;;  %v202_v46 = vld [vmem:[#allocation6] sm:$0x1]  ;;  %v207_v57 = vshrl.u32 %v204_v42, 7  ;;  %s559_s4 = smov [#allocation13]  }
  0x60   :  { %338 = vmatprep.subr.bf16.mxu0 %v557_v0  ;;  %v326_v5 = vunpack.c.l.bf16 %v325_v3  ;;  %v327_v6 = vunpack.c.h.bf16 %v325_v3  ;;  %v318_v33 = vld [vmem:[#allocation9] ss:$0 sm:$0xff]  ;;  %v203_v47 = vunpack.c.l.bf16 %v202_v46  ;;  %v322_v61 = vld [vmem:[#allocation11] ss:$0 sm:$0xff]  ;;  %vm247_vm9 = vcmask 1041408   ;;  %s290_s27 = sshll.u32 %s559_s4, 4  ;;  %s291_s27 = int_to_ptr.vmem [resolvable:$true] %s290_s27 }
  0x61   :  { %v113_v11 = vsel %vm103_vm2, %v330_v7, 0.0  ;;  %v114_v12 = vsel %vm103_vm2, %v331_v8, 0.0  ;;  %vm213_vm5 = vcmp.lt.s32.totalorder %v205_v44, 8  ;;  %vm211_vm8 = vcmp.lt.s32.totalorder %v207_v57, 2  ;;  %s560_s15 = smov [#allocation15]   ;;  %s474_s17 = scalar_lea.vmem %s291_s27, 16 }
  0x62   :  { %v104_v9 = vsel %vm103_vm2, %v326_v5, 0.0  ;;  %v105_v10 = vsel %vm103_vm2, %v327_v6, 0.0  ;;  %v115_v14 = vadd.f32 %v114_v12, %v113_v11  ;;  %s300_s16 = sshll.u32 %s560_s15, 4  ;;  %p475_p12 = scmp.ne.s32.totalorder %s291_s27, %s474_s17  ;;  %s674_s16 = int_to_ptr.vmem [resolvable:$true] %s300_s16 }
  0x63   :  { %339 = vmatpush3.bf16.msra.mxu0 %v359_v2  ;;  %v106_v13 = vadd.f32 %v105_v10, %v104_v9  ;;  %s478_s18 = scalar_lea.vmem %s291_s27, 32  ;;  %p479_p13 = scmp.lt.s32.totalorder %s291_s27, %s291_s27 }
  0x64   :  { %v116_v16 = vrot.slane %v115_v14, 4  ;;  %p480_p0 = scmp.lt.s32.totalorder %s478_s18, %s474_s17 }
  0x65   :  { %v107_v15 = vrot.slane %v106_v13, 4  ;;  %v102_v25 = vld [vmem:[#allocation2] sm:$0x3] }
  0x66   :  { %v117_v18 = vadd.f32 %v116_v16, %v115_v14  ;;  %p481_p1 = por %p480_p0, %p479_p13 }
  0x67   :  { %v108_v17 = vadd.f32 %v107_v15, %v106_v13 }
  0x68   :  { %v118_v20 = vrot.slane %v117_v18, 2  ;;  %p482_p2 = pnand %p481_p1, %p475_p12 }
  0x69   :  { %v109_v19 = vrot.slane %v108_v17, 2 }
  0x6a   :  { %v119_v22 = vadd.f32 %v118_v20, %v117_v18 }
  0x6b   :  { %v110_v21 = vadd.f32 %v109_v19, %v108_v17 }
  0x6c   :  { %v120_v24 = vrot.slane %v119_v22, 1 }
  0x6d   :  { %v111_v23 = vrot.slane %v110_v21, 1 }
  0x6e   :  { %v121_v27 = vadd.f32 %v120_v24, %v119_v22 }
  0x6f   :  { %v112_v26 = vadd.f32 %v111_v23, %v110_v21 }
  0x71   :  { %v125_v28 = vsel %vm124_vm3, %v121_v27, %v112_v26 }
  0x72   :  { %v127_v29 = vadd.f32 %v125_v28, %v102_v25 }
  0x74   :  { %129 = vst.msk [vmem:[#allocation2] sm:$0x3] %vm92_vm0, %v127_v29 }
  0x7b   :  { %v133_v30 = vld [vmem:[#allocation2] sm:$0x3] }
  0x7c   :  { %v134_v31 = vmul.f32 0.0625, %v133_v30 }
  0x7e   :  { %v135_v32 = vpack.c.bf16 %v134_v31, %v134_v31 }
  0x80   :  { %341 = vmatmul.mubr.msk.bf16.vlgmr.msra.gmra.mrb[0].mxu0 %vm103_vm2, %v135_v32 }
 0x153   :  { %v196_v34 = vpop.f32.mrb[0].mxu0 }
 0x154   :  { %v197_v35 = vadd.f32 %v318_v33, %v196_v34  ;;  %v342_v36 = vpop.f32.mrb[1].mxu0 }
 0x155   :  { %v199_v37 = vpop.f32.mrb[2].mxu0 }
 0x156   :  { %v219_v38 = vand.u32 2147483647, %v197_v35  ;;  %v343_v39 = vpop.f32.mrb[3].mxu0  ;;  %vm212_vm4 = vcmp.gt.f32.partialorder %v197_v35, 0.4054651  ;;  %v218_v56 = vmin.f32 %v197_v35, 0.0 }
 0x157   :  { %vm216_vm6 = vmand %vm212_vm4, %vm213_vm5 }
 0x158   :  { %v220_v40 = vsub.f32 0.0, %v219_v38  ;;  %v217_v49 = vsel %vm216_vm6, 1.0, %v203_v47 }
 0x159   :  { %v233_v53 = vsub.f32 1.0, %v217_v49  ;;  %v262_v3 = vsub.f32 %v217_v49, %v203_v47 }
 0x15a   :  { %v221_v41 = vmul.f32 1.442695, %v220_v40 }
 0x15b   :  { %v234_v60 = vmul.f32 %v233_v53, %v197_v35  ;;  %v263_v4 = vsel %vm247_vm9, %v262_v3, 0.0 }
 0x15c   :  { %360 = vpow2.f32 %v221_v41 }
 0x166   :  { %v361_v43 = vpop.eup %360 }
 0x167   :  { %v223_v45 = vadd.f32 1.0, %v361_v43  ;;  %v226_v48 = vmul.f32 -0.5, %v361_v43  ;;  %v229_v51 = vand.u32 2147483647, %v361_v43 }
 0x169   :  { %362 = vlog2.f32 %v223_v45  ;;  %v227_v50 = vadd.f32 1.0, %v226_v48  ;;  %vm230_vm7 = vcmp.lt.f32.partialorder %v229_v51, 0.0004427343 }
 0x16b   :  { %v228_v55 = vmul.f32 %v361_v43, %v227_v50 }
 0x173   :  { %v363_v52 = vpop.eup %362 }
 0x174   :  { %v225_v54 = vmul.f32 0.6931472, %v363_v52 }
 0x176   :  { %v231_v58 = vsel %vm230_vm7, %v228_v55, %v225_v54 }
 0x177   :  { %v232_v59 = vsub.f32 %v218_v56, %v231_v58 }
 0x179   :  { %v235_v62 = vsub.f32 %v234_v60, %v232_v59 }
 0x17b   :  { %v243_v63 = vmul.f32 %v322_v61, %v235_v62 }
 0x17d   :  { %v246_v1 = vsel %vm211_vm8, %v243_v63, 0.0 }
 0x17e   :  { %v248_v2 = vsel %vm247_vm9, %v246_v1, 0.0 }
 0x17f   :  { %249 = vadd.xlane.f32.xlu0 %v248_v2 }
 0x183   :  { %264 = vadd.xlane.f32.xlu0 %v263_v4 }
 0x20c   :  { %v250_v5 = vpop.xlane.xlu0 %249 }
 0x20d   :  { %v251_v6 = vrot.slane %v250_v5, 4 }
 0x20f   :  { %v252_v7 = vadd.f32 %v251_v6, %v250_v5 }
 0x210   :  { %v265_v8 = vpop.xlane.xlu0 %264 }
 0x211   :  { %v253_v9 = vrot.slane %v252_v7, 2  ;;  %vm266_vm10 = vcmp.gt.f32.partialorder %v265_v8, 0.0 }
 0x212   :  { %v323_v10 = vsel %vm266_vm10, 1.0, %v557_v0 }
 0x213   :  { %v269_v11 = vmul.f32 %v323_v10, %v217_v49  ;;  %v272_v12 = vpack.c.bf16 %v323_v10, %v323_v10  ;;  %v254_v13 = vadd.f32 %v253_v9, %v252_v7 }
 0x215   :  { %v270_v14 = vpack.c.bf16 %v269_v11, %v269_v11  ;;  %273 = vst [vmem:[#allocation15] sm:$0x1] %v272_v12  ;;  %v255_v15 = vrot.slane %v254_v13, 1 }
 0x217   :  { %271 = vst [vmem:[#allocation13] sm:$0x1] %v270_v14  ;;  %v256_v16 = vadd.f32 %v255_v15, %v254_v13 }
 0x218   :  { %485 = shalt.err (!%p482_p2)
}
 0x219   :  { %s486_s21 = scalar_lea.hbm %s724_s6, 16 }
 0x21a   :  { %p487_p3 = scmp.ne.s32.totalorder %s724_s6, %s486_s21  ;;  %p490_p4 = scmp.lt.u32.totalorder %s486_s21, %s724_s6 }
 0x21c   :  { %p492_p5 = pnand %p490_p4, %p487_p3 }
 0x21e   :  { %495 = shalt.err (!%p492_p5)
}
 0x21f   :  { %293 = dma.vmem_to_hbm [thread:$0]  %s291_s27, 16, %s724_s6, [#allocation14]   ;;  %344 = vpush %v256_v16 }
 0x220   :  { %s496_s26 = scalar_lea.vmem %s674_s16, 16  ;;  %s500_s28 = scalar_lea.vmem %s674_s16, 32 }
 0x221   :  { %p497_p6 = scmp.ne.s32.totalorder %s674_s16, %s496_s26  ;;  %p501_p7 = scmp.lt.s32.totalorder %s674_s16, %s674_s16 }
 0x222   :  { %p502_p8 = scmp.lt.s32.totalorder %s500_s28, %s496_s26 }
 0x224   :  { %p503_p9 = por %p502_p8, %p501_p7 }
 0x226   :  { %p504_p10 = pnand %p503_p9, %p497_p6 }
 0x228   :  { %507 = shalt.err (!%p504_p10)
}
 0x229   :  { %s508_s8 = scalar_lea.hbm %s725_s7, 16 }
 0x22a   :  { %p509_p11 = scmp.ne.s32.totalorder %s725_s7, %s508_s8  ;;  %p512_p12 = scmp.lt.u32.totalorder %s508_s8, %s725_s7 }
 0x22c   :  { %p514_p13 = pnand %p512_p12, %p509_p11 }
 0x22e   :  { %517 = shalt.err (!%p514_p13)
}
 0x22f   :  { %303 = dma.vmem_to_hbm [thread:$0]  %s674_s16, 16, %s725_s7, [#allocation14]  }
 0x230   :  { %s561_s14 = smov [#allocation12]  }
 0x231   :  { %s280_s2 = sshll.u32 %s561_s14, 4  ;;  %s281_s2 = int_to_ptr.vmem [resolvable:$true] %s280_s2 }
 0x232   :  { %s518_s27 = scalar_lea.vmem %s281_s2, 128  ;;  %p523_p1 = scmp.lt.s32.totalorder %s281_s2, %s281_s2 }
 0x233   :  { %p519_p0 = scmp.ne.s32.totalorder %s281_s2, %s518_s27  ;;  %p524_p2 = scmp.lt.s32.totalorder %s518_s27, %s518_s27 }
 0x235   :  { %p525_p3 = por %p524_p2, %p523_p1 }
 0x237   :  { %p526_p4 = pnand %p525_p3, %p519_p0 }
 0x250   :  { %s345_s3 = spop %344 }
 0x251   :  { %s258_s4 = smul.f32 0.125, %s345_s3 }
 0x253   :  { %v259_v0 = vstv %s258_s4 }
 0x254   :  { %261 = vst [vmem:[#allocation12] sm:$0xff] %v259_v0 }
 0x255   :  { %529 = shalt.err (!%p526_p4)
}
 0x256   :  { %s530_s18 = scalar_lea.hbm %s723_s5, 128 }
 0x257   :  { %p531_p5 = scmp.ne.s32.totalorder %s723_s5, %s530_s18  ;;  %p534_p6 = scmp.lt.u32.totalorder %s530_s18, %s723_s5 }
 0x259   :  { %p536_p7 = pnand %p534_p6, %p531_p5 }
 0x25b   :  { %539 = shalt.err (!%p536_p7)
}
 0x25c   :  { %283 = dma.vmem_to_hbm [thread:$0]  %s281_s2, 128, %s723_s5, [#allocation5]  }
 0x25d   :  { %546 = dma.done.wait [#allocation5], 128  }
 0x25e   :  { %547 = vsyncadd [#allocation5], 4294967168 }
 0x25f   :  { %548 = dma.done.wait [#allocation14], 32  }
 0x260   :  { %549 = vsyncadd [#allocation14], 4294967264 }
 0x261   :  { %313 = vsyncpa [#allocation4], 1 }
 0x262   :  { %314 = vsyncpa [#allocation7], 1 }
 0x263   :  { %315 = vsyncpa [#allocation10], 1 }
 0x264   :  { %316 = vsyncpa [#allocation5], 1 }
 0x265   :  { %317 = vsyncpa [#allocation14], 1 }

</bundles_post_ra>
